<compile_context>
chip_gen: v6e
topology: v6e:2x2x1
jax: 0.10.0
libtpu: 0.0.40
codegen_flags: <defaults>
</compile_context>

<pallas_src>
import functools
import math

import jax
import jax.numpy as jnp
from jax import lax
from jax.experimental import pallas as pl
from jax.experimental.pallas import tpu as pltpu

# ---------------- model hyperparameters (small, consistent with the module) --
BATCH = 2
SEQ = 8
EMBED = 32
NUM_HEADS = 4
HEAD_DIM = EMBED // NUM_HEADS
MLP_RATIO = 4.0
HIDDEN = int(EMBED * MLP_RATIO)  # 128
LN_EPS = 1e-5                    # nn.LayerNorm default
_NEG_INF = -1e30
_PACK_LANES = 128                # >= max(3*EMBED, HIDDEN, EMBED)


def _normalize(h):
    # LayerNorm without affine (gamma/beta are folded into the following matmul).
    mu = jnp.mean(h, axis=-1, keepdims=True)
    var = jnp.mean((h - mu) ** 2, axis=-1, keepdims=True)
    return (h - mu) * lax.rsqrt(var + LN_EPS)


def _gelu_exact(x):
    # nn.GELU() default = exact erf-based GELU
    return 0.5 * x * (1.0 + lax.erf(x * (1.0 / math.sqrt(2.0))))


def _transformer_block_kernel(
    x_ref,        # (B*S, E)        f32
    wqkv_ref,     # (E, 3E)         bf16  (LN1 affine + q-scale folded)
    wproj_ref,    # (E, E)          bf16
    w1_ref,       # (E, H)          bf16  (LN2 affine folded)
    w2_ref,       # (H, E)          bf16
    bias_ref,     # (4, 128)        f32   rows: bqkv', bfc1', bproj, bfc2
    hm_ref,       # (NH*B*S, E)     bf16  head-selection mask
    mbias_ref,    # (B*S, NH*B*S)   f32   additive cross-batch mask (0 / -1e30)
    o_ref,        # (B*S, E)        f32
    *, num_heads, head_dim,
):
    f32, bf16 = jnp.float32, jnp.bfloat16
    embed = num_heads * head_dim
    hidden = w1_ref.shape[1]

    x = x_ref[...]

    bqkv = bias_ref[0:1, 0:3 * embed]
    bfc1 = bias_ref[1:2, 0:hidden]
    bproj = bias_ref[2:3, 0:embed]
    bfc2 = bias_ref[3:4, 0:embed]
    hm = hm_ref[...]                       # (64, 32) bf16
    mbias = mbias_ref[...]                 # (16, 64) f32

    # ---- Multi-head self-attention on LayerNorm(x) ----
    h1 = _normalize(x)
    qkv = jnp.dot(h1.astype(bf16), wqkv_ref[...], preferred_element_type=f32) + bqkv
    q = qkv[:, 0 * embed:1 * embed]        # already scaled by head_dim**-0.5
    k = qkv[:, 1 * embed:2 * embed]
    v = qkv[:, 2 * embed:3 * embed]

    # Head-tiled, head-masked K/V: row (h, r') carries only head h's lanes of k/v[r'].
    ak = jnp.tile(k, (num_heads, 1)).astype(bf16) * hm     # (64, 32)
    av = jnp.tile(v, (num_heads, 1)).astype(bf16) * hm     # (64, 32)

    # s[r, h*rows + r'] = <q_scaled[r, head h], k[r', head h]>  -- one matmul
    s = lax.dot_general(q.astype(bf16), ak, (((1,), (1,)), ((), ())),
                        preferred_element_type=f32)        # (16, 64)
    s = s + mbias                                           # cross-batch mask
    s = s - jnp.max(s, axis=-1, keepdims=True)              # exact blockwise shift
    p = jnp.exp(s).astype(bf16)                              # (16, 64)

    # Fused PV + softmax-denominator matmul: RHS = [av | hm]  (64, 64).
    nd = jnp.dot(p, jnp.concatenate([av, hm], axis=1),
                 preferred_element_type=f32)                 # (16, 64)
    attn = nd[:, 0:embed] * pl.reciprocal(nd[:, embed:2 * embed], approx=True)

    attn = jnp.dot(attn.astype(bf16), wproj_ref[...], preferred_element_type=f32)
    x = x + attn + bproj

    # ---- MLP on LayerNorm(x) ----
    h2 = _normalize(x)
    h2 = jnp.dot(h2.astype(bf16), w1_ref[...], preferred_element_type=f32) + bfc1
    h2 = _gelu_exact(h2)
    h2 = jnp.dot(h2.astype(bf16), w2_ref[...], preferred_element_type=f32) + bfc2

    o_ref[...] = x + h2


def prepare_inputs(params, batch, seq, num_heads=NUM_HEADS):
    """One-time param prep: folds, bf16 casts, mask constants, bias packing."""
    f32, bf16 = jnp.float32, jnp.bfloat16
    embed = params["wqkv"].shape[0]
    head_dim = embed // num_heads
    hidden = params["w1"].shape[1]
    rows = batch * seq
    scale = head_dim ** (-0.5)

    # Fold LN1 gamma/beta into wqkv/bqkv (f32, exact).
    wqkv = params["wqkv"] * params["g1"].reshape(embed, 1)
    bqkv = params["b1"] @ params["wqkv"] + params["bqkv"]
    # Fold the attention scale into the Q columns (f32, exact before bf16 cast).
    qscale = jnp.concatenate(
        [jnp.full((1, embed), scale, f32), jnp.ones((1, 2 * embed), f32)], axis=1)
    wqkv = wqkv * qscale
    bqkv = bqkv * qscale

    # Fold LN2 gamma/beta into w1/bfc1 (f32, exact).
    w1 = params["w1"] * params["g2"].reshape(embed, 1)
    bfc1 = params["b2"] @ params["w1"] + params["bfc1"]

    # Pack the four remaining bias vectors into a single (4, 128) f32 array.
    bias_pack = jnp.zeros((4, _PACK_LANES), f32)
    bias_pack = bias_pack.at[0, 0:3 * embed].set(bqkv[0])
    bias_pack = bias_pack.at[1, 0:hidden].set(bfc1[0])
    bias_pack = bias_pack.at[2, 0:embed].set(params["bproj"][0])
    bias_pack = bias_pack.at[3, 0:embed].set(params["bfc2"][0])

    # Head-selection mask: hm[h*rows + r', hh*head_dim + d] = 1.0 iff h == hh.
    row_head = jnp.arange(num_heads * rows) // rows
    col_head = jnp.arange(embed) // head_dim
    hm = (row_head[:, None] == col_head[None, :]).astype(bf16)          # (64, 32)

    # Cross-batch additive mask (heads are already separated by column block).
    qb = jnp.arange(rows) // seq
    kb = (jnp.arange(num_heads * rows) % rows) // seq
    mbias = jnp.where(qb[:, None] == kb[None, :], 0.0, _NEG_INF).astype(f32)

    return {
        "wqkv": wqkv.astype(bf16),
        "wproj": params["wproj"].astype(bf16),
        "w1": w1.astype(bf16),
        "w2": params["w2"].astype(bf16),
        "bias_pack": bias_pack,
        "hm": hm,
        "mbias": mbias,
    }


@jax.jit
def transformer_block(x, prepped):
    B, S, E = x.shape
    x2d = x.reshape(B * S, E)

    args = (
        x2d,
        prepped["wqkv"], prepped["wproj"], prepped["w1"], prepped["w2"],
        prepped["bias_pack"], prepped["hm"], prepped["mbias"],
    )

    kernel = functools.partial(
        _transformer_block_kernel,
        num_heads=NUM_HEADS, head_dim=E // NUM_HEADS)

    # No grid: whole problem (~30 KiB) resident in VMEM; one program.
    # TODO(synk): if B*S grows, add a row-block grid axis with
    # dimension_semantics=("parallel",) so v7x's second TensorCore is used.
    out = pl.pallas_call(
        kernel,
        out_shape=jax.ShapeDtypeStruct((B * S, E), x.dtype),
        in_specs=[pl.BlockSpec(memory_space=pltpu.MemorySpace.VMEM)
                  for _ in args],
        out_specs=pl.BlockSpec(memory_space=pltpu.MemorySpace.VMEM),
    )(*args)
    return out.reshape(B, S, E)


def transformer_block_ref(x, p):
    """Pure-JAX f32 reference mirroring the PyTorch forward (dropout=0)."""
    def ln(h, g, b):
        mu = jnp.mean(h, axis=-1, keepdims=True)
        var = jnp.mean((h - mu) ** 2, axis=-1, keepdims=True)
        return (h - mu) / jnp.sqrt(var + LN_EPS) * g + b

    B, S, E = x.shape
    h = ln(x, p["g1"], p["b1"])
    qkv = h @ p["wqkv"] + p["bqkv"]                                    # (B,S,3E)
    qkv = qkv.reshape(B, S, 3, NUM_HEADS, HEAD_DIM).transpose(2, 0, 3, 1, 4)
    q, k, v = qkv[0], qkv[1], qkv[2]                                   # (B,H,S,Dh)
    attn = (q @ jnp.swapaxes(k, -2, -1)) * HEAD_DIM ** (-0.5)
    attn = jax.nn.softmax(attn, axis=-1)
    out = (attn @ v).transpose(0, 2, 1, 3).reshape(B, S, E)
    out = out @ p["wproj"] + p["bproj"]
    x = x + out
    h2 = ln(x, p["g2"], p["b2"])
    h2 = h2 @ p["w1"] + p["bfc1"]
    h2 = 0.5 * h2 * (1.0 + lax.erf(h2 / math.sqrt(2.0)))
    h2 = h2 @ p["w2"] + p["bfc2"]
    return x + h2


def init_params(key):
    ks = jax.random.split(key, 6)
    f32 = jnp.float32
    return {
        "g1": jnp.ones((1, EMBED), f32),
        "b1": jnp.zeros((1, EMBED), f32),
        # weights stored as (in_features, out_features) == PyTorch weight.T
        "wqkv": 0.02 * jax.random.normal(ks[0], (EMBED, 3 * EMBED), f32),
        "bqkv": 0.02 * jax.random.normal(ks[1], (1, 3 * EMBED), f32),
        "wproj": 0.02 * jax.random.normal(ks[2], (EMBED, EMBED), f32),
        "bproj": jnp.zeros((1, EMBED), f32),
        "g2": jnp.ones((1, EMBED), f32),
        "b2": jnp.zeros((1, EMBED), f32),
        "w1": 0.02 * jax.random.normal(ks[3], (EMBED, HIDDEN), f32),
        "bfc1": 0.02 * jax.random.normal(ks[4], (1, HIDDEN), f32),
        "w2": 0.02 * jax.random.normal(ks[5], (HIDDEN, EMBED), f32),
        "bfc2": jnp.zeros((1, EMBED), f32),
    }


if __name__ == "__main__":
    key = jax.random.PRNGKey(0)
    kx, kp = jax.random.split(key)
    x = jax.random.normal(kx, (BATCH, SEQ, EMBED), jnp.float32)
    params = init_params(kp)

    prepped = jax.tree_util.tree_map(
        jax.block_until_ready, prepare_inputs(params, BATCH, SEQ))

    out = transformer_block(x, prepped)
    out = jax.block_until_ready(out)

    ref = transformer_block_ref(x, params)
    assert out.shape == (BATCH, SEQ, EMBED)
    err = float(jnp.max(jnp.abs(out - ref)))
    assert jnp.allclose(out, ref, rtol=2e-3, atol=2e-3), err
    print("KERNEL_OK")
</pallas_src>

<mosaic_0001>
module attributes {stable_mosaic.version = 11 : i64} {
  func.func @_transformer_block_kernel(%arg0: memref<16x32xf32, #tpu.memory_space<vmem>>, %arg1: memref<32x96xbf16, #tpu.memory_space<vmem>>, %arg2: memref<32x32xbf16, #tpu.memory_space<vmem>>, %arg3: memref<32x128xbf16, #tpu.memory_space<vmem>>, %arg4: memref<128x32xbf16, #tpu.memory_space<vmem>>, %arg5: memref<4x128xf32, #tpu.memory_space<vmem>>, %arg6: memref<64x32xbf16, #tpu.memory_space<vmem>>, %arg7: memref<16x64xf32, #tpu.memory_space<vmem>>, %arg8: memref<16x32xf32, #tpu.memory_space<vmem>>) attributes {dimension_semantics = [], scalar_prefetch = 0 : i64, scratch_operands = 0 : i64, tpu.core_type = #tpu.core_type<tc>} {
    %c0 = arith.constant 0 : index
    %c0_0 = arith.constant 0 : index
    %0 = vector.load %arg0[%c0, %c0_0] : memref<16x32xf32, #tpu.memory_space<vmem>>, vector<16x32xf32>
    %c0_1 = arith.constant 0 : index
    %c0_2 = arith.constant 0 : index
    %1 = vector.load %arg5[%c0_1, %c0_2] : memref<4x128xf32, #tpu.memory_space<vmem>>, vector<1x96xf32>
    %c1 = arith.constant 1 : index
    %c0_3 = arith.constant 0 : index
    %2 = vector.load %arg5[%c1, %c0_3] : memref<4x128xf32, #tpu.memory_space<vmem>>, vector<1x128xf32>
    %c2 = arith.constant 2 : index
    %c0_4 = arith.constant 0 : index
    %3 = vector.load %arg5[%c2, %c0_4] : memref<4x128xf32, #tpu.memory_space<vmem>>, vector<1x32xf32>
    %c3 = arith.constant 3 : index
    %c0_5 = arith.constant 0 : index
    %4 = vector.load %arg5[%c3, %c0_5] : memref<4x128xf32, #tpu.memory_space<vmem>>, vector<1x32xf32>
    %c0_6 = arith.constant 0 : index
    %c0_7 = arith.constant 0 : index
    %5 = vector.load %arg6[%c0_6, %c0_7] : memref<64x32xbf16, #tpu.memory_space<vmem>>, vector<64x32xbf16>
    %c0_8 = arith.constant 0 : index
    %c0_9 = arith.constant 0 : index
    %6 = vector.load %arg7[%c0_8, %c0_9] : memref<16x64xf32, #tpu.memory_space<vmem>>, vector<16x64xf32>
    %cst = arith.constant dense<0.000000e+00> : vector<16xf32>
    %7 = vector.multi_reduction <add>, %0, %cst [1] : vector<16x32xf32> to vector<16xf32>
    %8 = vector.shape_cast %7 : vector<16xf32> to vector<16x1xf32>
    %cst_10 = arith.constant 3.200000e+01 : f32
    %9 = vector.broadcast %cst_10 : f32 to vector<16x1xf32>
    %10 = arith.divf %8, %9 : vector<16x1xf32>
    %11 = vector.broadcast %10 : vector<16x1xf32> to vector<16x32xf32>
    %12 = arith.subf %0, %11 : vector<16x32xf32>
    %13 = arith.mulf %12, %12 : vector<16x32xf32>
    %cst_11 = arith.constant dense<0.000000e+00> : vector<16xf32>
    %14 = vector.multi_reduction <add>, %13, %cst_11 [1] : vector<16x32xf32> to vector<16xf32>
    %15 = vector.shape_cast %14 : vector<16xf32> to vector<16x1xf32>
    %cst_12 = arith.constant 3.200000e+01 : f32
    %16 = vector.broadcast %cst_12 : f32 to vector<16x1xf32>
    %17 = arith.divf %15, %16 : vector<16x1xf32>
    %18 = vector.broadcast %10 : vector<16x1xf32> to vector<16x32xf32>
    %19 = arith.subf %0, %18 : vector<16x32xf32>
    %cst_13 = arith.constant 9.99999974E-6 : f32
    %20 = vector.broadcast %cst_13 : f32 to vector<16x1xf32>
    %21 = arith.addf %17, %20 : vector<16x1xf32>
    %22 = math.rsqrt %21 : vector<16x1xf32>
    %23 = vector.broadcast %22 : vector<16x1xf32> to vector<16x32xf32>
    %24 = arith.mulf %19, %23 : vector<16x32xf32>
    %25 = arith.truncf %24 : vector<16x32xf32> to vector<16x32xbf16>
    %c0_14 = arith.constant 0 : index
    %c0_15 = arith.constant 0 : index
    %26 = vector.load %arg1[%c0_14, %c0_15] : memref<32x96xbf16, #tpu.memory_space<vmem>>, vector<32x96xbf16>
    %cst_16 = arith.constant dense<0.000000e+00> : vector<16x96xf32>
    %27 = tpu.matmul %25, %26, %cst_16 {dimension_numbers = #tpu.dot_dimension_numbers<[1], [0], [0], [1], [0, 0, 1, 1], [], []>} : vector<16x32xbf16>, vector<32x96xbf16>, vector<16x96xf32> -> vector<16x96xf32>
    %28 = vector.broadcast %1 : vector<1x96xf32> to vector<16x96xf32>
    %29 = arith.addf %27, %28 : vector<16x96xf32>
    %30 = vector.extract_strided_slice %29 {offsets = [0, 0], sizes = [16, 32], strides = [1, 1]} : vector<16x96xf32> to vector<16x32xf32>
    %31 = vector.extract_strided_slice %29 {offsets = [0, 32], sizes = [16, 32], strides = [1, 1]} : vector<16x96xf32> to vector<16x32xf32>
    %32 = vector.extract_strided_slice %29 {offsets = [0, 64], sizes = [16, 32], strides = [1, 1]} : vector<16x96xf32> to vector<16x32xf32>
    %33 = tpu.concatenate %31, %31, %31, %31 in 0 : vector<16x32xf32>, vector<16x32xf32>, vector<16x32xf32>, vector<16x32xf32> -> vector<64x32xf32>
    %34 = arith.truncf %33 : vector<64x32xf32> to vector<64x32xbf16>
    %35 = arith.mulf %34, %5 : vector<64x32xbf16>
    %36 = tpu.concatenate %32, %32, %32, %32 in 0 : vector<16x32xf32>, vector<16x32xf32>, vector<16x32xf32>, vector<16x32xf32> -> vector<64x32xf32>
    %37 = arith.truncf %36 : vector<64x32xf32> to vector<64x32xbf16>
    %38 = arith.mulf %37, %5 : vector<64x32xbf16>
    %39 = arith.truncf %30 : vector<16x32xf32> to vector<16x32xbf16>
    %cst_17 = arith.constant dense<0.000000e+00> : vector<16x64xf32>
    %40 = tpu.matmul %39, %35, %cst_17 {dimension_numbers = #tpu.dot_dimension_numbers<[1], [1], [0], [0], [0, 0, 1, 0], [], []>} : vector<16x32xbf16>, vector<64x32xbf16>, vector<16x64xf32> -> vector<16x64xf32>
    %41 = arith.addf %40, %6 : vector<16x64xf32>
    %cst_18 = arith.constant dense<0xFF800000> : vector<16xf32>
    %42 = vector.multi_reduction <maximumf>, %41, %cst_18 [1] : vector<16x64xf32> to vector<16xf32>
    %43 = vector.shape_cast %42 : vector<16xf32> to vector<16x1xf32>
    %44 = vector.broadcast %43 : vector<16x1xf32> to vector<16x64xf32>
    %45 = arith.subf %41, %44 : vector<16x64xf32>
    %46 = math.exp %45 : vector<16x64xf32>
    %47 = arith.truncf %46 : vector<16x64xf32> to vector<16x64xbf16>
    %48 = tpu.concatenate %38, %5 in 1 : vector<64x32xbf16>, vector<64x32xbf16> -> vector<64x64xbf16>
    %cst_19 = arith.constant dense<0.000000e+00> : vector<16x64xf32>
    %49 = tpu.matmul %47, %48, %cst_19 {dimension_numbers = #tpu.dot_dimension_numbers<[1], [0], [0], [1], [0, 0, 1, 1], [], []>} : vector<16x64xbf16>, vector<64x64xbf16>, vector<16x64xf32> -> vector<16x64xf32>
    %50 = vector.extract_strided_slice %49 {offsets = [0, 0], sizes = [16, 32], strides = [1, 1]} : vector<16x64xf32> to vector<16x32xf32>
    %51 = vector.extract_strided_slice %49 {offsets = [0, 32], sizes = [16, 32], strides = [1, 1]} : vector<16x64xf32> to vector<16x32xf32>
    %52 = tpu.reciprocal %51 {approx = true} : vector<16x32xf32> -> vector<16x32xf32>
    %53 = arith.mulf %50, %52 : vector<16x32xf32>
    %54 = arith.truncf %53 : vector<16x32xf32> to vector<16x32xbf16>
    %c0_20 = arith.constant 0 : index
    %c0_21 = arith.constant 0 : index
    %55 = vector.load %arg2[%c0_20, %c0_21] : memref<32x32xbf16, #tpu.memory_space<vmem>>, vector<32x32xbf16>
    %cst_22 = arith.constant dense<0.000000e+00> : vector<16x32xf32>
    %56 = tpu.matmul %54, %55, %cst_22 {dimension_numbers = #tpu.dot_dimension_numbers<[1], [0], [0], [1], [0, 0, 1, 1], [], []>} : vector<16x32xbf16>, vector<32x32xbf16>, vector<16x32xf32> -> vector<16x32xf32>
    %57 = arith.addf %0, %56 : vector<16x32xf32>
    %58 = vector.broadcast %3 : vector<1x32xf32> to vector<16x32xf32>
    %59 = arith.addf %57, %58 : vector<16x32xf32>
    %cst_23 = arith.constant dense<0.000000e+00> : vector<16xf32>
    %60 = vector.multi_reduction <add>, %59, %cst_23 [1] : vector<16x32xf32> to vector<16xf32>
    %61 = vector.shape_cast %60 : vector<16xf32> to vector<16x1xf32>
    %cst_24 = arith.constant 3.200000e+01 : f32
    %62 = vector.broadcast %cst_24 : f32 to vector<16x1xf32>
    %63 = arith.divf %61, %62 : vector<16x1xf32>
    %64 = vector.broadcast %63 : vector<16x1xf32> to vector<16x32xf32>
    %65 = arith.subf %59, %64 : vector<16x32xf32>
    %66 = arith.mulf %65, %65 : vector<16x32xf32>
    %cst_25 = arith.constant dense<0.000000e+00> : vector<16xf32>
    %67 = vector.multi_reduction <add>, %66, %cst_25 [1] : vector<16x32xf32> to vector<16xf32>
    %68 = vector.shape_cast %67 : vector<16xf32> to vector<16x1xf32>
    %cst_26 = arith.constant 3.200000e+01 : f32
    %69 = vector.broadcast %cst_26 : f32 to vector<16x1xf32>
    %70 = arith.divf %68, %69 : vector<16x1xf32>
    %71 = vector.broadcast %63 : vector<16x1xf32> to vector<16x32xf32>
    %72 = arith.subf %59, %71 : vector<16x32xf32>
    %cst_27 = arith.constant 9.99999974E-6 : f32
    %73 = vector.broadcast %cst_27 : f32 to vector<16x1xf32>
    %74 = arith.addf %70, %73 : vector<16x1xf32>
    %75 = math.rsqrt %74 : vector<16x1xf32>
    %76 = vector.broadcast %75 : vector<16x1xf32> to vector<16x32xf32>
    %77 = arith.mulf %72, %76 : vector<16x32xf32>
    %78 = arith.truncf %77 : vector<16x32xf32> to vector<16x32xbf16>
    %c0_28 = arith.constant 0 : index
    %c0_29 = arith.constant 0 : index
    %79 = vector.load %arg3[%c0_28, %c0_29] : memref<32x128xbf16, #tpu.memory_space<vmem>>, vector<32x128xbf16>
    %cst_30 = arith.constant dense<0.000000e+00> : vector<16x128xf32>
    %80 = tpu.matmul %78, %79, %cst_30 {dimension_numbers = #tpu.dot_dimension_numbers<[1], [0], [0], [1], [0, 0, 1, 1], [], []>} : vector<16x32xbf16>, vector<32x128xbf16>, vector<16x128xf32> -> vector<16x128xf32>
    %81 = vector.broadcast %2 : vector<1x128xf32> to vector<16x128xf32>
    %82 = arith.addf %80, %81 : vector<16x128xf32>
    %cst_31 = arith.constant 5.000000e-01 : f32
    %83 = vector.broadcast %cst_31 : f32 to vector<16x128xf32>
    %84 = arith.mulf %83, %82 : vector<16x128xf32>
    %cst_32 = arith.constant 0.707106769 : f32
    %85 = vector.broadcast %cst_32 : f32 to vector<16x128xf32>
    %86 = arith.mulf %82, %85 : vector<16x128xf32>
    %87 = math.erf %86 : vector<16x128xf32>
    %cst_33 = arith.constant 1.000000e+00 : f32
    %88 = vector.broadcast %cst_33 : f32 to vector<16x128xf32>
    %89 = arith.addf %88, %87 : vector<16x128xf32>
    %90 = arith.mulf %84, %89 : vector<16x128xf32>
    %91 = arith.truncf %90 : vector<16x128xf32> to vector<16x128xbf16>
    %c0_34 = arith.constant 0 : index
    %c0_35 = arith.constant 0 : index
    %92 = vector.load %arg4[%c0_34, %c0_35] : memref<128x32xbf16, #tpu.memory_space<vmem>>, vector<128x32xbf16>
    %cst_36 = arith.constant dense<0.000000e+00> : vector<16x32xf32>
    %93 = tpu.matmul %91, %92, %cst_36 {dimension_numbers = #tpu.dot_dimension_numbers<[1], [0], [0], [1], [0, 0, 1, 1], [], []>} : vector<16x128xbf16>, vector<128x32xbf16>, vector<16x32xf32> -> vector<16x32xf32>
    %94 = vector.broadcast %4 : vector<1x32xf32> to vector<16x32xf32>
    %95 = arith.addf %93, %94 : vector<16x32xf32>
    %96 = arith.addf %59, %95 : vector<16x32xf32>
    %c0_37 = arith.constant 0 : index
    %c0_38 = arith.constant 0 : index
    %97 = vector.load %arg8[%c0_37, %c0_38] : memref<16x32xf32, #tpu.memory_space<vmem>>, vector<16x32xf32>
    tpu.vector_store %arg8[%c0_37, %c0_38], %96 {strides = array<i32>} : memref<16x32xf32, #tpu.memory_space<vmem>>, vector<16x32xf32>,
    return
  }
}

</mosaic_0001>

<bundles_post_ra>
// kernel: transformer_block.1
= control target key start
LH: loop header
LB: loop body
LE: loop exit
PB: predicated region body
PF: predicated region fallthrough
CT: control target
= control target key end

     0   :  { %vm47_vm0 = vcmask 261120   ;;  %s1096_s0 = inlined_call_operand.vmem [shape: f32[16,32], index: 0, kind: input, shape index: {}]   ;;  %s1097_s1 = inlined_call_operand.vmem [shape: bf16[32,96], index: 1, kind: input, shape index: {}]   ;;  %s1098_s2 = inlined_call_operand.vmem [shape: bf16[32,32], index: 2, kind: input, shape index: {}]   ;;  %s1099_s3 = inlined_call_operand.vmem [shape: bf16[32,128], index: 3, kind: input, shape index: {}]   ;;  %s1100_s4 = inlined_call_operand.vmem [shape: bf16[128,32], index: 4, kind: input, shape index: {}]   ;;  %s1101_s5 = inlined_call_operand.vmem [shape: f32[4,128], index: 5, kind: input, shape index: {}]   ;;  %s1102_s6 = inlined_call_operand.vmem [shape: bf16[64,32], index: 6, kind: input, shape index: {}]   ;;  %s1103_s7 = inlined_call_operand.vmem [shape: f32[16,64], index: 7, kind: input, shape index: {}]   ;;  %s1104_s8 = inlined_call_operand.hbm [shape: f32[16,32], index: 8, kind: output, shape index: {}]  }
   0x1   :  { %v906_v0 = vld [vmem:[%s1096_s0] sm:$0xff]  ;;  %v911_v1 = vld [vmem:[%s1096_s0 + $0x8] sm:$0xff] }
   0x2   :  { %v48_v2 = vsel %vm47_vm0, %v906_v0, 0.0  ;;  %v51_v3 = vsel %vm47_vm0, %v911_v1, 0.0 }
   0x3   :  { %49 = vadd.xlane.f32.xlu0 %v48_v2 }
   0x7   :  { %52 = vadd.xlane.f32.xlu0 %v51_v3 }
   0x8   :  { %13 = vsyncpa [#allocation3], 0  ;;  %v790_v14 = vld [vmem:[%s1097_s1 + $0x8] sm:$0xff]   ;;  %v850_v15 = vmov 0.0   ;;  %vm851_vm1 = vmmov 0   ;;  %v791_v16 = vld [vmem:[%s1097_s1] sm:$0xff]  }
   0x9   :  { %714 = vmatprep.subr.bf16.mxu0 %v850_v15  ;;  %718 = vmatprep.mubr.msk.bf16.mxu0 %vm851_vm1, %v850_v15  ;;  %v792_v17 = vld [vmem:[%s1102_s6 + $0x10] sm:$0xff]   ;;  %v794_v18 = vld [vmem:[%s1102_s6 + $0x18] sm:$0xff]   ;;  %s852_s16 = smov 32   ;;  %v793_v19 = vld [vmem:[%s1102_s6 + $0x8] sm:$0xff]   ;;  %s853_s21 = smov 96   ;;  %vm261_vm2 = vcmask 523264  }
   0xa   :  { %715 = vmatpush3.bf16.msra.mxu0 %v790_v14  ;;  %722 = vmatprep.subr.bf16.mxu1 %v850_v15  ;;  %v795_v20 = vld [vmem:[%s1102_s6] sm:$0xff]   ;;  %s854_s22 = smov 64   ;;  %s855_s27 = smov [#allocation2]  }
   0xb   :  { %716 = vmatprep.subr.bf16.mxu0 %v850_v15  ;;  %730 = vmatprep.mubr.msk.bf16.mxu1 %vm851_vm1, %v850_v15  ;;  %v659_v34 = vld [vmem:[%s1101_s5] ss:$0 sm:$0xff]  ;;  %s648_s28 = sshll.u32 %s855_s27, 4  ;;  %s649_s28 = int_to_ptr.vmem [resolvable:$true] %s648_s28 }
   0xc   :  { %s828_s29 = scalar_lea.vmem %s649_s28, 256  ;;  %p833_p1 = scmp.lt.s32.totalorder %s649_s28, %s649_s28 }
   0xd   :  { %p829_p0 = scmp.ne.s32.totalorder %s649_s28, %s828_s29  ;;  %p834_p2 = scmp.lt.s32.totalorder %s828_s29, %s828_s29 }
   0xe   :  { %717 = vmatpush3.bf16.msra.mxu0 %v791_v16 }
   0xf   :  { %734 = vmatprep.subr.bf16.mxu0 %v850_v15  ;;  %p835_p3 = por %p834_p2, %p833_p1 }
  0x11   :  { %p836_p4 = pnand %p835_p3, %p829_p0 }
  0x1d   :  { %167 = vrot.lane.b32.xlu0 %v794_v18, %s852_s16 }
  0x8c   :  { %v50_v4 = vpop.xlane.xlu0 %49 }
  0x8d   :  { %v55_v5 = vmul.f32 0.03125, %v50_v4  ;;  %v45_v4 = vld [vmem:[%s1103_s7] sm:$0xff] }
  0x8f   :  { %v57_v6 = vsub.f32 %v906_v0, %v55_v5 }
  0x90   :  { %v53_v7 = vpop.xlane.xlu0 %52 }
  0x91   :  { %v56_v8 = vmul.f32 0.03125, %v53_v7  ;;  %v59_v9 = vmul.f32 %v57_v6, %v57_v6 }
  0x93   :  { %v58_v10 = vsub.f32 %v911_v1, %v56_v8  ;;  %v61_v11 = vsel %vm47_vm0, %v59_v9, 0.0  ;;  %v46_v8 = vld [vmem:[%s1103_s7 + $0x8] sm:$0xff] }
  0x94   :  { %62 = vadd.xlane.f32.xlu1 %v61_v11  ;;  %v168_v41 = vpop.permute.xlu0 %167 }
  0x95   :  { %v60_v12 = vmul.f32 %v58_v10, %v58_v10 }
  0x97   :  { %v64_v13 = vsel %vm47_vm0, %v60_v12, 0.0 }
  0x98   :  { %65 = vadd.xlane.f32.xlu1 %v64_v13 }
  0xa9   :  { %165 = vrot.lane.b32.xlu1 %v792_v17, %s852_s16 }
  0xad   :  { %163 = vrot.lane.b32.xlu1 %v793_v19, %s852_s16 }
  0xb1   :  { %161 = vrot.lane.b32.xlu1 %v795_v20, %s852_s16 }
 0x11d   :  { %v63_v21 = vpop.xlane.xlu1 %62 }
 0x11e   :  { %v67_v22 = vmul.f32 0.03125, %v63_v21 }
 0x120   :  { %v69_v23 = vadd.f32 1e-05, %v67_v22 }
 0x121   :  { %v66_v24 = vpop.xlane.xlu1 %65 }
 0x122   :  { %v68_v25 = vmul.f32 0.03125, %v66_v24  ;;  %808 = vrsqrt.f32 %v69_v23 }
 0x124   :  { %v70_v26 = vadd.f32 1e-05, %v68_v25 }
 0x125   :  { %v166_v32 = vpop.permute.xlu1 %165 }
 0x126   :  { %810 = vrsqrt.f32 %v70_v26 }
 0x129   :  { %v953_v37 = vpop.permute.xlu1 %163 }
 0x12d   :  { %v959_v45 = vpop.permute.xlu1 %161 }
 0x12f   :  { %v809_v27 = vpop.eup %808 }
 0x130   :  { %v73_v29 = vmul.f32 %v809_v27, %v57_v6 }
 0x133   :  { %v811_v28 = vpop.eup %810 }
 0x134   :  { %v74_v30 = vmul.f32 %v811_v28, %v58_v10 }
 0x136   :  { %v75_v31 = vpack.c.bf16 %v74_v30, %v73_v29 }
 0x138   :  { %719 = vmatmul.mubr.msk.bf16.vlgmr.msra.gmra.mxu0 %vm47_vm0, %v75_v31  ;;  %v796_v31 = vld [vmem:[%s1098_s2 + $0x8] sm:$0xff]  }
 0x139   :  { %742 = vmatprep.mubr.msk.bf16.mxu0 %vm851_vm1, %v850_v15 }
 0x1f8   :  { %v133_v33 = vpop.f32.mrf.mxu0 }
 0x1f9   :  { %v134_v38 = vadd.f32 %v659_v34, %v133_v33 }
 0x1fa   :  { %v720_v35 = vpop.f32.mrf.mxu0 }
 0x1fc   :  { %v136_v36 = vpop.f32.mrf.mxu0 }
 0x1fd   :  { %v137_v39 = vadd.f32 %v659_v34, %v136_v36  ;;  %v797_v34 = vld [vmem:[%s1098_s2] sm:$0xff]  }
 0x1fe   :  { %v721_v40 = vpop.f32.mrf.mxu0 }
 0x1ff   :  { %v955_v42 = vpack.c.bf16 %v137_v39, %v134_v38 }
 0x201   :  { %v176_v43 = vmul.bf16 %v168_v41, %v955_v42  ;;  %v175_v44 = vmul.bf16 %v166_v32, %v955_v42  ;;  %v174_v46 = vmul.bf16 %v953_v37, %v955_v42  ;;  %v173_v47 = vmul.bf16 %v959_v45, %v955_v42 }
 0x203   :  { %201 = vrot.lane.b32.xlu1 %v175_v44, %s853_s21  ;;  %203 = vrot.lane.b32.xlu0 %v176_v43, %s853_s21  ;;  %v672_v43 = vld [vmem:[%s1101_s5 + $0x2] ss:$0 sm:$0xff] }
 0x207   :  { %197 = vrot.lane.b32.xlu1 %v173_v47, %s853_s21  ;;  %199 = vrot.lane.b32.xlu0 %v174_v46, %s853_s21 }
 0x20b   :  { %181 = vrot.lane.b32.xlu1 %v792_v17, %s854_s22  ;;  %183 = vrot.lane.b32.xlu0 %v794_v18, %s854_s22 }
 0x20f   :  { %177 = vrot.lane.b32.xlu1 %v795_v20, %s854_s22  ;;  %179 = vrot.lane.b32.xlu0 %v793_v19, %s854_s22 }
 0x275   :  { %v202_v48 = vpop.permute.xlu1 %201  ;;  %v204_v49 = vpop.permute.xlu0 %203 }
 0x276   :  { %v218_v50 = vsel %vm47_vm0, %v204_v49, 0  ;;  %v215_v55 = vsel %vm47_vm0, %v202_v48, 0 }
 0x277   :  { %723 = vmatpush3.bf16.xpose.msra.mxu1 %v218_v50 }
 0x278   :  { %724 = vmatprep.subr.bf16.mxu1 %v850_v15 }
 0x279   :  { %v198_v51 = vpop.permute.xlu1 %197  ;;  %v200_v52 = vpop.permute.xlu0 %199 }
 0x27a   :  { %v212_v58 = vsel %vm47_vm0, %v200_v52, 0  ;;  %v209_v59 = vsel %vm47_vm0, %v198_v51, 0 }
 0x27d   :  { %v182_v53 = vpop.permute.xlu1 %181  ;;  %v184_v54 = vpop.permute.xlu0 %183 }
 0x27e   :  { %v191_v56 = vmul.bf16 %v182_v53, %v955_v42  ;;  %v192_v57 = vmul.bf16 %v184_v54, %v955_v42 }
 0x27f   :  { %725 = vmatpush3.bf16.xpose.msra.mxu1 %v215_v55 }
 0x280   :  { %283 = vrot.lane.b32.xlu1 %v191_v56, %s854_s22  ;;  %285 = vrot.lane.b32.xlu0 %v192_v57, %s854_s22 }
 0x281   :  { %726 = vmatprep.subr.bf16.mxu1 %v850_v15  ;;  %v180_v60 = vpop.permute.xlu0 %179  ;;  %v178_v61 = vpop.permute.xlu1 %177 }
 0x282   :  { %v189_v14 = vmul.bf16 %v178_v61, %v955_v42  ;;  %v190_v16 = vmul.bf16 %v180_v60, %v955_v42 }
 0x287   :  { %727 = vmatpush3.bf16.xpose.msra.mxu1 %v212_v58 }
 0x288   :  { %728 = vmatprep.subr.bf16.mxu1 %v850_v15 }
 0x28f   :  { %729 = vmatpush3.bf16.xpose.msra.mxu1 %v209_v59 }
 0x290   :  { %762 = vmatprep.subr.bf16.mxu1 %v850_v15 }
 0x296   :  { %731 = vmatmul.mubr.msk.bf16.vlgmr.msra.gmra.mxu1 %vm47_vm0, %v955_v42 }
 0x297   :  { %778 = vmatprep.mubr.msk.bf16.mxu1 %vm851_vm1, %v850_v15 }
 0x2f2   :  { %v286_v62 = vpop.permute.xlu0 %285  ;;  %v284_v2 = vpop.permute.xlu1 %283 }
 0x2f3   :  { %v301_v63 = vsel %vm47_vm0, %v286_v62, %v168_v41  ;;  %v297_v3 = vsel %vm47_vm0, %v284_v2, %v166_v32  ;;  %v798_v62 = vld [vmem:[%s1099_s3 + $0x8] sm:$0xff]   ;;  %v800_v2 = vld [vmem:[%s1100_s4 + $0x38] sm:$0xff]  }
 0x2f4   :  { %735 = vmatpush3.bf16.msra.mxu0 %v301_v63  ;;  %v799_v63 = vld [vmem:[%s1099_s3] sm:$0xff]   ;;  %763 = vmatpush3.bf16.msra.mxu1 %v800_v2 }
 0x2f5   :  { %736 = vmatprep.subr.bf16.mxu0 %v850_v15  ;;  %764 = vmatprep.subr.bf16.mxu1 %v850_v15 }
 0x2f8   :  { %737 = vmatpush3.bf16.msra.mxu0 %v297_v3 }
 0x2f9   :  { %738 = vmatprep.subr.bf16.mxu0 %v850_v15 }
 0x356   :  { %v254_v5 = vpop.f32.mrf.mxu1 }
 0x357   :  { %v255_v6 = vadd.f32 %v254_v5, %v45_v4 }
 0x358   :  { %v732_v7 = vpop.f32.mrf.mxu1 }
 0x359   :  { %v262_v9 = vsel %vm261_vm2, %v255_v6, -inf }
 0x35a   :  { %v257_v10 = vpop.f32.mrf.mxu1  ;;  %263 = vmax.xlane.f32.xlu0 %v262_v9 }
 0x35b   :  { %v258_v11 = vadd.f32 %v257_v10, %v46_v8 }
 0x35c   :  { %v733_v12 = vpop.f32.mrf.mxu1 }
 0x35d   :  { %v265_v13 = vsel %vm261_vm2, %v258_v11, -inf }
 0x35e   :  { %266 = vmax.xlane.f32.xlu1 %v265_v13 }
 0x36f   :  { %279 = vrot.lane.b32.xlu1 %v189_v14, %s854_s22  ;;  %v801_v14 = vld [vmem:[%s1100_s4 + $0x30] sm:$0xff]  }
 0x370   :  { %281 = vrot.lane.b32.xlu0 %v190_v16, %s854_s22  ;;  %765 = vmatpush3.bf16.msra.mxu1 %v801_v14  ;;  %v802_v16 = vld [vmem:[%s1100_s4 + $0x28] sm:$0xff]  }
 0x371   :  { %766 = vmatprep.subr.bf16.mxu1 %v850_v15 }
 0x374   :  { %767 = vmatpush3.bf16.msra.mxu1 %v802_v16 }
 0x375   :  { %768 = vmatprep.subr.bf16.mxu1 %v850_v15 }
 0x3e3   :  { %v264_v17 = vpop.xlane.xlu0 %263 }
 0x3e4   :  { %v268_v18 = vsub.f32 %v255_v6, %v264_v17  ;;  %v803_v17 = vld [vmem:[%s1100_s4 + $0x20] sm:$0xff]  }
 0x3e5   :  { %769 = vmatpush3.bf16.msra.mxu1 %v803_v17 }
 0x3e6   :  { %v270_v19 = vmul.f32 1.442695, %v268_v18  ;;  %770 = vmatprep.subr.bf16.mxu1 %v850_v15  ;;  %v804_v18 = vld [vmem:[%s1100_s4 + $0x18] sm:$0xff]  }
 0x3e7   :  { %v267_v20 = vpop.xlane.xlu1 %266  ;;  %v282_v21 = vpop.permute.xlu0 %281 }
 0x3e8   :  { %v269_v22 = vsub.f32 %v258_v11, %v267_v20  ;;  %v293_v23 = vsel %vm47_vm0, %v282_v21, %v953_v37  ;;  %812 = vpow2.f32 %v270_v19  ;;  %v805_v19 = vld [vmem:[%s1100_s4 + $0x10] sm:$0xff]   ;;  %v806_v20 = vld [vmem:[%s1100_s4 + $0x8] sm:$0xff]   ;;  %v807_v21 = vld [vmem:[%s1100_s4] sm:$0xff]  }
 0x3e9   :  { %739 = vmatpush3.bf16.msra.mxu0 %v293_v23  ;;  %771 = vmatpush3.bf16.msra.mxu1 %v804_v18 }
 0x3ea   :  { %v272_v24 = vmul.f32 1.442695, %v269_v22  ;;  %740 = vmatprep.subr.bf16.mxu0 %v850_v15  ;;  %772 = vmatprep.subr.bf16.mxu1 %v850_v15  ;;  %v673_v22 = vld [vmem:[%s1101_s5 + $0x1] ss:$0 sm:$0xff] }
 0x3eb   :  { %v280_v25 = vpop.permute.xlu1 %279 }
 0x3ec   :  { %814 = vpow2.f32 %v272_v24  ;;  %v289_v26 = vsel %vm47_vm0, %v280_v25, %v959_v45 }
 0x3ed   :  { %741 = vmatpush3.bf16.msra.mxu0 %v289_v26  ;;  %773 = vmatpush3.bf16.msra.mxu1 %v805_v19 }
 0x3ee   :  { %746 = vmatprep.subr.bf16.mxu0 %v850_v15  ;;  %774 = vmatprep.subr.bf16.mxu1 %v850_v15 }
 0x3f1   :  { %775 = vmatpush3.bf16.msra.mxu1 %v806_v20 }
 0x3f2   :  { %776 = vmatprep.subr.bf16.mxu1 %v850_v15 }
 0x3f5   :  { %v813_v27 = vpop.eup %812  ;;  %777 = vmatpush3.bf16.msra.mxu1 %v807_v21 }
 0x3f9   :  { %v815_v28 = vpop.eup %814 }
 0x3fa   :  { %v274_v29 = vpack.c.bf16 %v815_v28, %v813_v27 }
 0x3fc   :  { %743 = vmatmul.mubr.msk.bf16.vlgmr.msra.gmra.mxu0 %vm261_vm2, %v274_v29 }
 0x3fd   :  { %750 = vmatprep.mubr.msk.bf16.mxu0 %vm851_vm1, %v850_v15  ;;  %747 = vmatpush3.bf16.msra.mxu0 %v796_v31 }
 0x3fe   :  { %748 = vmatprep.subr.bf16.mxu0 %v850_v15 }
 0x401   :  { %749 = vmatpush3.bf16.msra.mxu0 %v797_v34 }
 0x402   :  { %754 = vmatprep.subr.bf16.mxu0 %v850_v15 }
 0x4bc   :  { %v340_v30 = vpop.f32.mrf.mxu0 }
 0x4bd   :  { %816 = vrcp.f32 %v340_v30 }
 0x4be   :  { %v744_v32 = vpop.f32.mrf.mxu0 }
 0x4c0   :  { %v343_v33 = vpop.f32.mrf.mxu0 }
 0x4c1   :  { %818 = vrcp.f32 %v343_v33 }
 0x4c2   :  { %v745_v35 = vpop.f32.mrf.mxu0 }
 0x4ca   :  { %v817_v36 = vpop.eup %816 }
 0x4cb   :  { %351 = vrot.lane.b32.xlu0 %v817_v36, %s853_s21 }
 0x4ce   :  { %v819_v37 = vpop.eup %818 }
 0x4cf   :  { %353 = vrot.lane.b32.xlu1 %v819_v37, %s853_s21 }
 0x53d   :  { %v352_v38 = vpop.permute.xlu0 %351 }
 0x53e   :  { %v357_v40 = vmul.f32 %v352_v38, %v340_v30 }
 0x541   :  { %v354_v39 = vpop.permute.xlu1 %353 }
 0x542   :  { %v358_v41 = vmul.f32 %v354_v39, %v343_v33  ;;  %v677_v39 = vld [vmem:[%s1101_s5 + $0x3] ss:$0 sm:$0xff] }
 0x544   :  { %v359_v42 = vpack.c.bf16 %v358_v41, %v357_v40 }
 0x546   :  { %751 = vmatmul.mubr.msk.bf16.vlgmr.msra.gmra.mxu0 %vm47_vm0, %v359_v42 }
 0x547   :  { %758 = vmatprep.mubr.msk.bf16.mxu0 %vm851_vm1, %v850_v15  ;;  %755 = vmatpush3.bf16.msra.mxu0 %v798_v62 }
 0x548   :  { %756 = vmatprep.subr.bf16.mxu0 %v850_v15 }
 0x54b   :  { %757 = vmatpush3.bf16.msra.mxu0 %v799_v63 }
 0x606   :  { %v413_v44 = vpop.f32.mrf.mxu0 }
 0x607   :  { %v420_v45 = vadd.f32 %v413_v44, %v906_v0 }
 0x608   :  { %v752_v46 = vpop.f32.mrf.mxu0 }
 0x609   :  { %v1031_v47 = vadd.f32 %v672_v43, %v420_v45 }
 0x60a   :  { %v416_v48 = vpop.f32.mrf.mxu0 }
 0x60b   :  { %v421_v49 = vadd.f32 %v416_v48, %v911_v1  ;;  %v428_v50 = vsel %vm47_vm0, %v1031_v47, 0.0 }
 0x60c   :  { %429 = vadd.xlane.f32.xlu0 %v428_v50  ;;  %v753_v51 = vpop.f32.mrf.mxu0 }
 0x60d   :  { %v1036_v52 = vadd.f32 %v672_v43, %v421_v49 }
 0x60f   :  { %v431_v53 = vsel %vm47_vm0, %v1036_v52, 0.0 }
 0x610   :  { %432 = vadd.xlane.f32.xlu1 %v431_v53 }
 0x695   :  { %v430_v54 = vpop.xlane.xlu0 %429 }
 0x696   :  { %v434_v55 = vmul.f32 0.03125, %v430_v54 }
 0x698   :  { %v436_v0 = vsub.f32 %v1031_v47, %v434_v55 }
 0x699   :  { %v433_v56 = vpop.xlane.xlu1 %432 }
 0x69a   :  { %v435_v57 = vmul.f32 0.03125, %v433_v56  ;;  %v438_v58 = vmul.f32 %v436_v0, %v436_v0 }
 0x69c   :  { %v437_v1 = vsub.f32 %v1036_v52, %v435_v57  ;;  %v440_v59 = vsel %vm47_vm0, %v438_v58, 0.0 }
 0x69d   :  { %441 = vadd.xlane.f32.xlu0 %v440_v59 }
 0x69e   :  { %v439_v60 = vmul.f32 %v437_v1, %v437_v1 }
 0x6a0   :  { %v443_v61 = vsel %vm47_vm0, %v439_v60, 0.0 }
 0x6a1   :  { %444 = vadd.xlane.f32.xlu0 %v443_v61 }
 0x726   :  { %v442_v3 = vpop.xlane.xlu0 %441 }
 0x727   :  { %v446_v4 = vmul.f32 0.03125, %v442_v3 }
 0x729   :  { %v448_v5 = vadd.f32 1e-05, %v446_v4 }
 0x72a   :  { %v445_v6 = vpop.xlane.xlu0 %444 }
 0x72b   :  { %v447_v7 = vmul.f32 0.03125, %v445_v6  ;;  %820 = vrsqrt.f32 %v448_v5 }
 0x72d   :  { %v449_v8 = vadd.f32 1e-05, %v447_v7 }
 0x72f   :  { %822 = vrsqrt.f32 %v449_v8 }
 0x738   :  { %v821_v9 = vpop.eup %820 }
 0x739   :  { %v452_v11 = vmul.f32 %v821_v9, %v436_v0 }
 0x73c   :  { %v823_v10 = vpop.eup %822 }
 0x73d   :  { %v453_v12 = vmul.f32 %v823_v10, %v437_v1 }
 0x73f   :  { %v454_v13 = vpack.c.bf16 %v453_v12, %v452_v11 }
 0x741   :  { %759 = vmatmul.mubr.msk.bf16.vlgmr.msra.gmra.mxu0 %vm47_vm0, %v454_v13 }
 0x801   :  { %v512_v23 = vpop.f32.mrf.mxu0 }
 0x802   :  { %v513_v24 = vadd.f32 %v673_v22, %v512_v23 }
 0x803   :  { %v760_v25 = vpop.f32.mrf.mxu0 }
 0x804   :  { %v521_v26 = vmul.f32 0.70710677, %v513_v24  ;;  %v519_v33 = vmul.f32 0.5, %v513_v24 }
 0x805   :  { %v515_v27 = vpop.f32.mrf.mxu0 }
 0x806   :  { %824 = verf.f32 %v521_v26  ;;  %v516_v28 = vadd.f32 %v673_v22, %v515_v27 }
 0x807   :  { %v761_v29 = vpop.f32.mrf.mxu0 }
 0x808   :  { %v522_v30 = vmul.f32 0.70710677, %v516_v28  ;;  %v520_v34 = vmul.f32 0.5, %v516_v28 }
 0x80a   :  { %826 = verf.f32 %v522_v30 }
 0x813   :  { %v825_v15 = vpop.eup %824 }
 0x814   :  { %v525_v31 = vadd.f32 1.0, %v825_v15 }
 0x816   :  { %v527_v36 = vmul.f32 %v525_v31, %v519_v33 }
 0x817   :  { %v827_v32 = vpop.eup %826 }
 0x818   :  { %v526_v35 = vadd.f32 1.0, %v827_v32 }
 0x81a   :  { %v528_v37 = vmul.f32 %v526_v35, %v520_v34 }
 0x81c   :  { %v529_v38 = vpack.c.bf16 %v528_v37, %v527_v36 }
 0x81e   :  { %779 = vmatmul.mubr.bf16.vlgmr.msra.gmra.mxu1 %v529_v38 }
 0x8de   :  { %v632_v40 = vpop.f32.mrf.mxu1 }
 0x8df   :  { %v633_v41 = vadd.f32 %v677_v39, %v632_v40 }
 0x8e0   :  { %v780_v42 = vpop.f32.mrf.mxu1 }
 0x8e1   :  { %v639_v43 = vadd.f32 %v633_v41, %v1031_v47 }
 0x8e2   :  { %v635_v44 = vpop.f32.mrf.mxu1 }
 0x8e3   :  { %641 = vst.msk [vmem:[#allocation2] sm:$0xff] %vm47_vm0, %v639_v43  ;;  %v636_v45 = vadd.f32 %v677_v39, %v635_v44 }
 0x8e4   :  { %v781_v46 = vpop.f32.mrf.mxu1 }
 0x8e5   :  { %v640_v48 = vadd.f32 %v636_v45, %v1036_v52 }
 0x8e7   :  { %642 = vst.msk [vmem:[#allocation2 + $0x8] sm:$0xff] %vm47_vm0, %v640_v48 }
 0x8e8   :  { %839 = shalt.err (!%p836_p4)
}
 0x8e9   :  { %s856_s5 = smov 128   ;;  %s857_s2 = smov 8  }
 0x8ea   :  { %654 = dma.vmem_to_hbm [thread:$0]  %s649_s28, 256, %s1104_s8, [#allocation3], %s856_s5, %s856_s5, %s857_s2  }
 0x8eb   :  { %848 = dma.done.wait [#allocation3], 256  }
 0x8ec   :  { %849 = vsyncadd [#allocation3], 4294967040 }
 0x8ed   :  { %658 = vsyncpa [#allocation3], 1 }

</bundles_post_ra>
